<compile_context>
chip_gen: v5e
topology: v5e:2x2
jax: 0.10.0
libtpu: 0.0.40
codegen_flags: <defaults>
</compile_context>

<pallas_src>
import math

import jax
import jax.numpy as jnp
from jax.experimental import pallas as pl
from jax.experimental.pallas import tpu as pltpu


def _round_up(x, m):
    return ((x + m - 1) // m) * m


# ----------------------------------------------------------------------------
# Pallas kernel: full TCN stack (causal dilated convs, ReLU, residual) + decoder
# ----------------------------------------------------------------------------
def make_tcn_kernel(num_blocks, kernel_size, dilations, cout_pads, l_pad, tile_nl):
    K = kernel_size
    # distinct non-zero causal shifts used by any tap of any block
    all_shifts = sorted({(K - 1 - k) * d for d in dilations for k in range(K)} - {0})

    def kernel(*refs):
        x_ref = refs[0]
        blk_refs = refs[1:1 + 4 * num_blocks]
        dec_w_ref, dec_b_ref, out_ref = refs[1 + 4 * num_blocks:]

        # per-segment lane position, computed once per grid step; one mask per shift
        lane = jax.lax.broadcasted_iota(jnp.int32, (1, tile_nl), 1)
        pos = lane % l_pad
        masks = {s: (pos >= s).astype(jnp.float32) for s in all_shifts if s < l_pad}

        def shifted(p, s):
            # shifted[:, j] = p[:, j - s] within each l_pad segment, 0 otherwise.
            if s == 0:
                return p
            if s >= l_pad:
                return jnp.zeros_like(p)
            return pltpu.roll(p, s, 1) * masks[s]

        h = x_ref[...]
        for i in range(num_blocks):
            w1big = blk_refs[4 * i][...]      # (2*Cout_p, K*Cin_p): conv1 taps + wds rows
            b1big = blk_refs[4 * i + 1][...]  # (2*Cout_p, 1): [b1 ; bds]
            w2s = blk_refs[4 * i + 2][...]    # (Cout_p, K*Cout_p): conv2 taps stacked
            b2 = blk_refs[4 * i + 3][...]     # (Cout_p, 1)
            d = dilations[i]
            tap_shifts = [(K - 1 - k) * d for k in range(K)]
            cout = cout_pads[i]

            # TODO(synk): nn.Dropout inside TemporalBlock is identity at inference.
            s1 = jnp.concatenate([shifted(h, s) for s in tap_shifts], axis=0)
            f1 = jnp.dot(w1big, s1, preferred_element_type=jnp.float32) + b1big
            o1 = jnp.maximum(f1[:cout], 0.0)   # conv1 + ReLU
            res = f1[cout:]                    # residual (downsample or identity) + bds
            s2 = jnp.concatenate([shifted(o1, s) for s in tap_shifts], axis=0)
            o2 = jnp.maximum(
                jnp.dot(w2s, s2, preferred_element_type=jnp.float32) + b2, 0.0)
            h = jnp.maximum(o2 + res, 0.0)

        y = jnp.dot(dec_w_ref[...], h, preferred_element_type=jnp.float32) + dec_b_ref[...]
        out_ref[...] = y.astype(out_ref.dtype)

    return kernel


# ----------------------------------------------------------------------------
# Wrapper: layout plumbing, weight stacking + pallas_call
# ----------------------------------------------------------------------------
def tcn_pallas_forward(tcn_in, params):
    """tcn_in: (N, C, L) float32  ->  (N, L) (output_size == 1 squeezed)."""
    N, C, L = tcn_in.shape
    K = params['kernel_size']
    blocks = params['blocks']
    num_blocks = len(blocks)
    dilations = [2 ** i for i in range(num_blocks)]

    # time padded to a multiple of 8; tiles of the flattened lane axis are
    # multiples of both 128 (lane tile) and l_pad (whole batch segments).
    l_pad = _round_up(L, 8)
    nl = N * l_pad
    base = (l_pad * 128) // math.gcd(l_pad, 128)
    tile_nl = min(base * max(1, 1024 // base), base * pl.cdiv(nl, base))
    nl_pad = _round_up(nl, tile_nl)

    C_p = _round_up(C, 8)

    # (N, C, L) -> (C, N, L) -> pad C/time -> flatten -> pad lane axis to tiles
    x2 = jnp.transpose(tcn_in, (1, 0, 2)).astype(jnp.float32)
    x2 = jnp.pad(x2, ((0, C_p - C), (0, 0), (0, l_pad - L)))
    x2 = x2.reshape(C_p, nl)
    x2 = jnp.pad(x2, ((0, 0), (0, nl_pad - nl)))

    # stack conv taps (and residual projection) into single matmul operands
    inputs = [x2]
    cout_pads = []
    cin, cin_p = C, C_p
    for blk in blocks:
        cout = blk['w1'].shape[0]
        cout_p = _round_up(cout, 8)
        cout_pads.append(cout_p)

        w1taps = jnp.zeros((cout_p, K * cin_p), jnp.float32)
        w2taps = jnp.zeros((cout_p, K * cout_p), jnp.float32)
        for k in range(K):
            w1taps = w1taps.at[:cout, k * cin_p:k * cin_p + cin].set(blk['w1'][:, :, k])
            w2taps = w2taps.at[:cout, k * cout_p:k * cout_p + cout].set(blk['w2'][:, :, k])
        # residual wds rows read the shift-0 input block (tap k = K-1)
        wds_rows = jnp.zeros((cout_p, K * cin_p), jnp.float32)
        wds_rows = wds_rows.at[:cout, (K - 1) * cin_p:(K - 1) * cin_p + cin].set(blk['wds'])
        w1big = jnp.concatenate([w1taps, wds_rows], axis=0)          # (2*cout_p, K*cin_p)

        b1big = jnp.zeros((2 * cout_p, 1), jnp.float32)
        b1big = b1big.at[:cout, 0].set(blk['b1'])
        b1big = b1big.at[cout_p:cout_p + cout, 0].set(blk['bds'])
        b2 = jnp.zeros((cout_p, 1), jnp.float32).at[:cout, 0].set(blk['b2'])

        inputs += [w1big, b1big, w2taps, b2]
        cin, cin_p = cout, cout_p

    O = params['dec_w'].shape[0]
    O_p = _round_up(O, 8)
    dec_w = jnp.zeros((O_p, cin_p), jnp.float32).at[:O, :cin].set(params['dec_w'])
    dec_b = jnp.zeros((O_p, 1), jnp.float32).at[:O, 0].set(params['dec_b'])
    inputs += [dec_w, dec_b]

    # BlockSpecs: activations/output tiled over the lane axis; weights resident
    # (constant block index -> no re-DMA across grid steps).
    def resident(a):
        nd = a.ndim
        return pl.BlockSpec(a.shape, lambda i, _nd=nd: (0,) * _nd)

    in_specs = [pl.BlockSpec((C_p, tile_nl), lambda i: (0, i))]
    in_specs += [resident(a) for a in inputs[1:]]
    out_spec = pl.BlockSpec((O_p, tile_nl), lambda i: (0, i))

    kernel = make_tcn_kernel(num_blocks, K, dilations, cout_pads, l_pad, tile_nl)
    out = pl.pallas_call(
        kernel,
        out_shape=jax.ShapeDtypeStruct((O_p, nl_pad), jnp.float32),
        grid=(nl_pad // tile_nl,),
        in_specs=in_specs,
        out_specs=out_spec,
        compiler_params=pltpu.CompilerParams(
            dimension_semantics=("parallel",),
            vmem_limit_bytes=64 << 20),
    )(*inputs)

    y = out[:O, :nl].reshape(O, N, l_pad)[:, :, :L]   # (O, N, L)
    y = jnp.transpose(y, (1, 2, 0))                   # (N, L, O) == decoder(y.transpose(1,2))
    return jnp.squeeze(y, -1) if O == 1 else y


# ----------------------------------------------------------------------------
# Deterministic stand-in for BertForMultiLable (not translatable to Pallas).
# TODO(synk): real pretrained BERT encoder replaced by embedding+pool+linear.
# ----------------------------------------------------------------------------
def bert_standin(bp, input_ids, segment_ids, attention_mask):
    emb = bp['tok_emb'][input_ids] + bp['seg_emb'][segment_ids]          # (N, S, H)
    mask = attention_mask.astype(jnp.float32)[..., None]                 # (N, S, 1)
    pooled = (emb * mask).sum(axis=1) / jnp.clip(mask.sum(axis=1), 1.0)  # (N, H)
    return pooled @ bp['w'] + bp['b']                                    # (N, out_bert)


# ----------------------------------------------------------------------------
# Full TCN.forward glue (slicing + BERT stand-in + concat) then Pallas TCN.
# ----------------------------------------------------------------------------
def full_forward(params, x, cfg):
    o = cfg['original_input_size']
    si, sm, ss = cfg['input_ids_size'], cfg['input_mask_size'], cfg['segment_ids_size']
    tcn_orig = x[:, :o, :]
    a = o
    ids_t = x[:, a:a + si, 0].astype(jnp.int32); a += si
    mask_t = x[:, a:a + sm, 0].astype(jnp.int32); a += sm
    seg_t = x[:, a:a + ss, 0].astype(jnp.int32); a += ss
    ids_b = x[:, a:a + si, 0].astype(jnp.int32); a += si
    mask_b = x[:, a:a + sm, 0].astype(jnp.int32); a += sm
    seg_b = x[:, a:, 0].astype(jnp.int32)

    L = x.shape[2]
    out_t = bert_standin(params['bert'], ids_t, seg_t, mask_t)
    out_t = jnp.repeat(out_t[:, :, None], L, axis=2)
    out_b = bert_standin(params['bert'], ids_b, seg_b, mask_b)
    out_b = jnp.repeat(out_b[:, :, None], L, axis=2)

    tcn_in = jnp.concatenate([tcn_orig, out_t, out_b], axis=1)  # (N, tcn_input_size, L)
    return tcn_pallas_forward(tcn_in, params), tcn_in


# ----------------------------------------------------------------------------
# Pure-JAX reference for the TCN + decoder (for numerical verification only).
# ----------------------------------------------------------------------------
def ref_tcn_decoder(params, tcn_in):
    K = params['kernel_size']
    h = tcn_in
    for i, blk in enumerate(params['blocks']):
        d = 2 ** i
        pad = (K - 1) * d

        def conv(inp, w, b, d=d, pad=pad):
            o = jax.lax.conv_general_dilated(
                inp, w, window_strides=(1,), padding=[(pad, 0)],
                rhs_dilation=(d,), dimension_numbers=('NCH', 'OIH', 'NCH'))
            return o + b[None, :, None]

        o1 = jax.nn.relu(conv(h, blk['w1'], blk['b1']))
        o2 = jax.nn.relu(conv(o1, blk['w2'], blk['b2']))
        res = jnp.einsum('oi,nil->nol', blk['wds'], h) + blk['bds'][None, :, None]
        h = jax.nn.relu(o2 + res)
    y = jnp.einsum('ncl,oc->nlo', h, params['dec_w']) + params['dec_b'][None, None, :]
    return jnp.squeeze(y, -1)


# ----------------------------------------------------------------------------
# Deterministic parameter initialization (synthetic, per module __init__ shapes).
# ----------------------------------------------------------------------------
def init_params(key, tcn_input_size, num_channels, kernel_size, output_size,
                output_size_bert, vocab=64, bert_hidden=16):
    keys = iter(jax.random.split(key, 64))
    blocks = []
    in_ch = tcn_input_size
    for out_ch in num_channels:
        blk = {
            # weight_norm is a reparameterization; effective weights generated directly.
            'w1': 0.01 * jax.random.normal(next(keys), (out_ch, in_ch, kernel_size), jnp.float32),
            'b1': 0.1 * jax.random.normal(next(keys), (out_ch,), jnp.float32),
            'w2': 0.01 * jax.random.normal(next(keys), (out_ch, out_ch, kernel_size), jnp.float32),
            'b2': 0.1 * jax.random.normal(next(keys), (out_ch,), jnp.float32),
        }
        if in_ch != out_ch:
            blk['wds'] = 0.01 * jax.random.normal(next(keys), (out_ch, in_ch), jnp.float32)
            blk['bds'] = 0.1 * jax.random.normal(next(keys), (out_ch,), jnp.float32)
        else:  # identity residual (no downsample conv in the reference TCN)
            blk['wds'] = jnp.eye(out_ch, dtype=jnp.float32)
            blk['bds'] = jnp.zeros((out_ch,), jnp.float32)
        blocks.append(blk)
        in_ch = out_ch

    return {
        'kernel_size': kernel_size,
        'blocks': blocks,
        # decoder init per init_weights(): weight ~ N(0, 0.01), bias = 0
        'dec_w': 0.01 * jax.random.normal(next(keys), (output_size, num_channels[-1]), jnp.float32),
        'dec_b': jnp.zeros((output_size,), jnp.float32),
        'bert': {
            'tok_emb': 0.1 * jax.random.normal(next(keys), (vocab, bert_hidden), jnp.float32),
            'seg_emb': 0.1 * jax.random.normal(next(keys), (2, bert_hidden), jnp.float32),
            'w': 0.1 * jax.random.normal(next(keys), (bert_hidden, output_size_bert), jnp.float32),
            'b': jnp.zeros((output_size_bert,), jnp.float32),
        },
    }


if __name__ == "__main__":
    cfg = dict(original_input_size=4, input_ids_size=8, input_mask_size=8,
               segment_ids_size=8, output_size_bert=6, output_size=1,
               num_channels=[32, 16], kernel_size=2)
    cfg['tcn_input_size'] = cfg['original_input_size'] + 2 * cfg['output_size_bert']
    N, L, vocab = 2, 5, 64   # L fixed at 5 by .repeat(1, 1, 5) in the reference forward

    key = jax.random.PRNGKey(0)
    kp, kx1, kx2, kx3 = jax.random.split(key, 4)
    params = init_params(kp, cfg['tcn_input_size'], cfg['num_channels'],
                         cfg['kernel_size'], cfg['output_size'],
                         cfg['output_size_bert'], vocab=vocab)

    # Build the packed (N, rows, 5) input: float features + int-valued BERT rows.
    orig = jax.random.normal(kx1, (N, cfg['original_input_size'], L), jnp.float32)

    def make_bert_rows(k):
        k1, k2, k3 = jax.random.split(k, 3)
        ids = jax.random.randint(k1, (N, cfg['input_ids_size']), 0, vocab).astype(jnp.float32)
        mask = jax.random.bernoulli(k2, 0.9, (N, cfg['input_mask_size'])).astype(jnp.float32)
        seg = jax.random.bernoulli(k3, 0.5, (N, cfg['segment_ids_size'])).astype(jnp.float32)
        return [jnp.repeat(v[:, :, None], L, axis=2) for v in (ids, mask, seg)]

    rows = [orig] + make_bert_rows(kx2) + make_bert_rows(kx3)
    x = jnp.concatenate(rows, axis=1)   # (2, 52, 5)

    y, tcn_in = full_forward(params, x, cfg)
    y = jax.block_until_ready(y)

    y_ref = ref_tcn_decoder(params, tcn_in)
    assert y.shape == (N, L), y.shape
    assert jnp.allclose(y, y_ref, atol=1e-4, rtol=1e-4), float(jnp.max(jnp.abs(y - y_ref)))
    print("KERNEL_OK")
</pallas_src>

<mosaic_0001>
module attributes {stable_mosaic.version = 11 : i64} {
  func.func @kernel(%arg0: i32, %arg1: memref<16x128xf32, #tpu.memory_space<vmem>>, %arg2: memref<64x32xf32, #tpu.memory_space<vmem>>, %arg3: memref<64x1xf32, #tpu.memory_space<vmem>>, %arg4: memref<32x64xf32, #tpu.memory_space<vmem>>, %arg5: memref<32x1xf32, #tpu.memory_space<vmem>>, %arg6: memref<32x64xf32, #tpu.memory_space<vmem>>, %arg7: memref<32x1xf32, #tpu.memory_space<vmem>>, %arg8: memref<16x32xf32, #tpu.memory_space<vmem>>, %arg9: memref<16x1xf32, #tpu.memory_space<vmem>>, %arg10: memref<8x16xf32, #tpu.memory_space<vmem>>, %arg11: memref<8x1xf32, #tpu.memory_space<vmem>>, %arg12: memref<8x128xf32, #tpu.memory_space<vmem>>) attributes {dimension_semantics = [#tpu.dimension_semantics<parallel>], iteration_bounds = array<i64: 1>, scalar_prefetch = 0 : i64, scratch_operands = 0 : i64, tpu.core_type = #tpu.core_type<tc>, window_params = [{transform_indices = @transform_0, window_bounds = array<i64: 16, 128>}, {pipeline_mode = #tpu.pipeline_mode<synchronous>, transform_indices = @transform_1, window_bounds = array<i64: 64, 32>}, {pipeline_mode = #tpu.pipeline_mode<synchronous>, transform_indices = @transform_2, window_bounds = array<i64: 64, 1>}, {pipeline_mode = #tpu.pipeline_mode<synchronous>, transform_indices = @transform_3, window_bounds = array<i64: 32, 64>}, {pipeline_mode = #tpu.pipeline_mode<synchronous>, transform_indices = @transform_4, window_bounds = array<i64: 32, 1>}, {pipeline_mode = #tpu.pipeline_mode<synchronous>, transform_indices = @transform_5, window_bounds = array<i64: 32, 64>}, {pipeline_mode = #tpu.pipeline_mode<synchronous>, transform_indices = @transform_6, window_bounds = array<i64: 32, 1>}, {pipeline_mode = #tpu.pipeline_mode<synchronous>, transform_indices = @transform_7, window_bounds = array<i64: 16, 32>}, {pipeline_mode = #tpu.pipeline_mode<synchronous>, transform_indices = @transform_8, window_bounds = array<i64: 16, 1>}, {pipeline_mode = #tpu.pipeline_mode<synchronous>, transform_indices = @transform_9, window_bounds = array<i64: 8, 16>}, {pipeline_mode = #tpu.pipeline_mode<synchronous>, transform_indices = @transform_10, window_bounds = array<i64: 8, 1>}, {transform_indices = @transform_11, window_bounds = array<i64: 8, 128>}]} {
    %0 = tpu.iota {dimensions = array<i32: 1>} : vector<1x128xi32>
    %c8_i32 = arith.constant 8 : i32
    %c0_i32 = arith.constant 0 : i32
    %1 = arith.cmpi eq, %c8_i32, %c0_i32 : i32
    %c1_i32 = arith.constant 1 : i32
    %2 = arith.select %1, %c1_i32, %c8_i32 : i32
    %3 = vector.broadcast %2 : i32 to vector<1x128xi32>
    %4 = arith.remsi %0, %3 : vector<1x128xi32>
    %c0_i32_0 = arith.constant 0 : i32
    %5 = vector.broadcast %c0_i32_0 : i32 to vector<1x128xi32>
    %6 = arith.cmpi ne, %4, %5 : vector<1x128xi32>
    %c0_i32_1 = arith.constant 0 : i32
    %7 = vector.broadcast %c0_i32_1 : i32 to vector<1x128xi32>
    %8 = arith.cmpi slt, %4, %7 : vector<1x128xi32>
    %c0_i32_2 = arith.constant 0 : i32
    %9 = arith.cmpi slt, %2, %c0_i32_2 : i32
    %10 = vector.broadcast %9 : i1 to vector<1x128xi1>
    %11 = vector.broadcast %10 : vector<1x128xi1> to vector<1x128xi1>
    %12 = arith.xori %8, %11 : vector<1x128xi1>
    %13 = arith.andi %12, %6 : vector<1x128xi1>
    %14 = vector.broadcast %2 : i32 to vector<1x128xi32>
    %15 = arith.addi %4, %14 : vector<1x128xi32>
    %16 = arith.select %13, %15, %4 : vector<1x128xi1>, vector<1x128xi32>
    %c1_i32_3 = arith.constant 1 : i32
    %17 = vector.broadcast %c1_i32_3 : i32 to vector<1x128xi32>
    %18 = arith.cmpi sge, %16, %17 : vector<1x128xi32>
    %19 = arith.extui %18 : vector<1x128xi1> to vector<1x128xi32>
    %20 = arith.sitofp %19 : vector<1x128xi32> to vector<1x128xf32>
    %c2_i32 = arith.constant 2 : i32
    %21 = vector.broadcast %c2_i32 : i32 to vector<1x128xi32>
    %22 = arith.cmpi sge, %16, %21 : vector<1x128xi32>
    %23 = arith.extui %22 : vector<1x128xi1> to vector<1x128xi32>
    %24 = arith.sitofp %23 : vector<1x128xi32> to vector<1x128xf32>
    %c0 = arith.constant 0 : index
    %c0_4 = arith.constant 0 : index
    %25 = vector.load %arg1[%c0, %c0_4] : memref<16x128xf32, #tpu.memory_space<vmem>>, vector<16x128xf32>
    %c0_5 = arith.constant 0 : index
    %c0_6 = arith.constant 0 : index
    %26 = vector.load %arg2[%c0_5, %c0_6] : memref<64x32xf32, #tpu.memory_space<vmem>>, vector<64x32xf32>
    %c0_7 = arith.constant 0 : index
    %c0_8 = arith.constant 0 : index
    %27 = vector.load %arg3[%c0_7, %c0_8] : memref<64x1xf32, #tpu.memory_space<vmem>>, vector<64x1xf32>
    %c0_9 = arith.constant 0 : index
    %c0_10 = arith.constant 0 : index
    %28 = vector.load %arg4[%c0_9, %c0_10] : memref<32x64xf32, #tpu.memory_space<vmem>>, vector<32x64xf32>
    %c0_11 = arith.constant 0 : index
    %c0_12 = arith.constant 0 : index
    %29 = vector.load %arg5[%c0_11, %c0_12] : memref<32x1xf32, #tpu.memory_space<vmem>>, vector<32x1xf32>
    %c1_i32_13 = arith.constant 1 : i32
    %30 = tpu.dynamic_rotate %25 by %c1_i32_13 dim 1 : vector<16x128xf32>, i32 -> vector<16x128xf32>
    %31 = vector.broadcast %20 : vector<1x128xf32> to vector<16x128xf32>
    %32 = arith.mulf %30, %31 : vector<16x128xf32>
    %33 = tpu.concatenate %32, %25 in 0 : vector<16x128xf32>, vector<16x128xf32> -> vector<32x128xf32>
    %cst = arith.constant dense<0.000000e+00> : vector<64x128xf32>
    %34 = tpu.matmul %26, %33, %cst {dimension_numbers = #tpu.dot_dimension_numbers<[1], [0], [0], [1], [0, 0, 1, 1], [], []>} : vector<64x32xf32>, vector<32x128xf32>, vector<64x128xf32> -> vector<64x128xf32>
    %35 = vector.broadcast %27 : vector<64x1xf32> to vector<64x128xf32>
    %36 = arith.addf %34, %35 : vector<64x128xf32>
    %37 = vector.extract_strided_slice %36 {offsets = [0, 0], sizes = [32, 128], strides = [1, 1]} : vector<64x128xf32> to vector<32x128xf32>
    %cst_14 = arith.constant 0.000000e+00 : f32
    %38 = vector.broadcast %cst_14 : f32 to vector<32x128xf32>
    %39 = arith.maximumf %37, %38 : vector<32x128xf32>
    %40 = vector.extract_strided_slice %36 {offsets = [32, 0], sizes = [32, 128], strides = [1, 1]} : vector<64x128xf32> to vector<32x128xf32>
    %c1_i32_15 = arith.constant 1 : i32
    %41 = tpu.dynamic_rotate %39 by %c1_i32_15 dim 1 : vector<32x128xf32>, i32 -> vector<32x128xf32>
    %42 = vector.broadcast %20 : vector<1x128xf32> to vector<32x128xf32>
    %43 = arith.mulf %41, %42 : vector<32x128xf32>
    %44 = tpu.concatenate %43, %39 in 0 : vector<32x128xf32>, vector<32x128xf32> -> vector<64x128xf32>
    %cst_16 = arith.constant dense<0.000000e+00> : vector<32x128xf32>
    %45 = tpu.matmul %28, %44, %cst_16 {dimension_numbers = #tpu.dot_dimension_numbers<[1], [0], [0], [1], [0, 0, 1, 1], [], []>} : vector<32x64xf32>, vector<64x128xf32>, vector<32x128xf32> -> vector<32x128xf32>
    %46 = vector.broadcast %29 : vector<32x1xf32> to vector<32x128xf32>
    %47 = arith.addf %45, %46 : vector<32x128xf32>
    %cst_17 = arith.constant 0.000000e+00 : f32
    %48 = vector.broadcast %cst_17 : f32 to vector<32x128xf32>
    %49 = arith.maximumf %47, %48 : vector<32x128xf32>
    %50 = arith.addf %49, %40 : vector<32x128xf32>
    %cst_18 = arith.constant 0.000000e+00 : f32
    %51 = vector.broadcast %cst_18 : f32 to vector<32x128xf32>
    %52 = arith.maximumf %50, %51 : vector<32x128xf32>
    %c0_19 = arith.constant 0 : index
    %c0_20 = arith.constant 0 : index
    %53 = vector.load %arg6[%c0_19, %c0_20] : memref<32x64xf32, #tpu.memory_space<vmem>>, vector<32x64xf32>
    %c0_21 = arith.constant 0 : index
    %c0_22 = arith.constant 0 : index
    %54 = vector.load %arg7[%c0_21, %c0_22] : memref<32x1xf32, #tpu.memory_space<vmem>>, vector<32x1xf32>
    %c0_23 = arith.constant 0 : index
    %c0_24 = arith.constant 0 : index
    %55 = vector.load %arg8[%c0_23, %c0_24] : memref<16x32xf32, #tpu.memory_space<vmem>>, vector<16x32xf32>
    %c0_25 = arith.constant 0 : index
    %c0_26 = arith.constant 0 : index
    %56 = vector.load %arg9[%c0_25, %c0_26] : memref<16x1xf32, #tpu.memory_space<vmem>>, vector<16x1xf32>
    %c2_i32_27 = arith.constant 2 : i32
    %57 = tpu.dynamic_rotate %52 by %c2_i32_27 dim 1 : vector<32x128xf32>, i32 -> vector<32x128xf32>
    %58 = vector.broadcast %24 : vector<1x128xf32> to vector<32x128xf32>
    %59 = arith.mulf %57, %58 : vector<32x128xf32>
    %60 = tpu.concatenate %59, %52 in 0 : vector<32x128xf32>, vector<32x128xf32> -> vector<64x128xf32>
    %cst_28 = arith.constant dense<0.000000e+00> : vector<32x128xf32>
    %61 = tpu.matmul %53, %60, %cst_28 {dimension_numbers = #tpu.dot_dimension_numbers<[1], [0], [0], [1], [0, 0, 1, 1], [], []>} : vector<32x64xf32>, vector<64x128xf32>, vector<32x128xf32> -> vector<32x128xf32>
    %62 = vector.broadcast %54 : vector<32x1xf32> to vector<32x128xf32>
    %63 = arith.addf %61, %62 : vector<32x128xf32>
    %64 = vector.extract_strided_slice %63 {offsets = [0, 0], sizes = [16, 128], strides = [1, 1]} : vector<32x128xf32> to vector<16x128xf32>
    %cst_29 = arith.constant 0.000000e+00 : f32
    %65 = vector.broadcast %cst_29 : f32 to vector<16x128xf32>
    %66 = arith.maximumf %64, %65 : vector<16x128xf32>
    %67 = vector.extract_strided_slice %63 {offsets = [16, 0], sizes = [16, 128], strides = [1, 1]} : vector<32x128xf32> to vector<16x128xf32>
    %c2_i32_30 = arith.constant 2 : i32
    %68 = tpu.dynamic_rotate %66 by %c2_i32_30 dim 1 : vector<16x128xf32>, i32 -> vector<16x128xf32>
    %69 = vector.broadcast %24 : vector<1x128xf32> to vector<16x128xf32>
    %70 = arith.mulf %68, %69 : vector<16x128xf32>
    %71 = tpu.concatenate %70, %66 in 0 : vector<16x128xf32>, vector<16x128xf32> -> vector<32x128xf32>
    %cst_31 = arith.constant dense<0.000000e+00> : vector<16x128xf32>
    %72 = tpu.matmul %55, %71, %cst_31 {dimension_numbers = #tpu.dot_dimension_numbers<[1], [0], [0], [1], [0, 0, 1, 1], [], []>} : vector<16x32xf32>, vector<32x128xf32>, vector<16x128xf32> -> vector<16x128xf32>
    %73 = vector.broadcast %56 : vector<16x1xf32> to vector<16x128xf32>
    %74 = arith.addf %72, %73 : vector<16x128xf32>
    %cst_32 = arith.constant 0.000000e+00 : f32
    %75 = vector.broadcast %cst_32 : f32 to vector<16x128xf32>
    %76 = arith.maximumf %74, %75 : vector<16x128xf32>
    %77 = arith.addf %76, %67 : vector<16x128xf32>
    %cst_33 = arith.constant 0.000000e+00 : f32
    %78 = vector.broadcast %cst_33 : f32 to vector<16x128xf32>
    %79 = arith.maximumf %77, %78 : vector<16x128xf32>
    %c0_34 = arith.constant 0 : index
    %c0_35 = arith.constant 0 : index
    %80 = vector.load %arg10[%c0_34, %c0_35] : memref<8x16xf32, #tpu.memory_space<vmem>>, vector<8x16xf32>
    %cst_36 = arith.constant dense<0.000000e+00> : vector<8x128xf32>
    %81 = tpu.matmul %80, %79, %cst_36 {dimension_numbers = #tpu.dot_dimension_numbers<[1], [0], [0], [1], [0, 0, 1, 1], [], []>} : vector<8x16xf32>, vector<16x128xf32>, vector<8x128xf32> -> vector<8x128xf32>
    %c0_37 = arith.constant 0 : index
    %c0_38 = arith.constant 0 : index
    %82 = vector.load %arg11[%c0_37, %c0_38] : memref<8x1xf32, #tpu.memory_space<vmem>>, vector<8x1xf32>
    %83 = vector.broadcast %82 : vector<8x1xf32> to vector<8x128xf32>
    %84 = arith.addf %81, %83 : vector<8x128xf32>
    %c0_39 = arith.constant 0 : index
    %c0_40 = arith.constant 0 : index
    %85 = vector.load %arg12[%c0_39, %c0_40] : memref<8x128xf32, #tpu.memory_space<vmem>>, vector<8x128xf32>
    tpu.vector_store %arg12[%c0_39, %c0_40], %84 {strides = array<i32>} : memref<8x128xf32, #tpu.memory_space<vmem>>, vector<8x128xf32>,
    return
  }
  func.func @transform_0(%arg0: i32) -> (i32, i32) {
    %c0_i32 = arith.constant 0 : i32
    %c0_i32_0 = arith.constant 0 : i32
    return %c0_i32, %arg0 : i32, i32
  }
  func.func @transform_1(%arg0: i32) -> (i32, i32) {
    %c0_i32 = arith.constant 0 : i32
    %c0_i32_0 = arith.constant 0 : i32
    %c0_i32_1 = arith.constant 0 : i32
    return %c0_i32, %c0_i32_0 : i32, i32
  }
  func.func @transform_2(%arg0: i32) -> (i32, i32) {
    %c0_i32 = arith.constant 0 : i32
    %c0_i32_0 = arith.constant 0 : i32
    %c0_i32_1 = arith.constant 0 : i32
    return %c0_i32, %c0_i32_0 : i32, i32
  }
  func.func @transform_3(%arg0: i32) -> (i32, i32) {
    %c0_i32 = arith.constant 0 : i32
    %c0_i32_0 = arith.constant 0 : i32
    %c0_i32_1 = arith.constant 0 : i32
    return %c0_i32, %c0_i32_0 : i32, i32
  }
  func.func @transform_4(%arg0: i32) -> (i32, i32) {
    %c0_i32 = arith.constant 0 : i32
    %c0_i32_0 = arith.constant 0 : i32
    %c0_i32_1 = arith.constant 0 : i32
    return %c0_i32, %c0_i32_0 : i32, i32
  }
  func.func @transform_5(%arg0: i32) -> (i32, i32) {
    %c0_i32 = arith.constant 0 : i32
    %c0_i32_0 = arith.constant 0 : i32
    %c0_i32_1 = arith.constant 0 : i32
    return %c0_i32, %c0_i32_0 : i32, i32
  }
  func.func @transform_6(%arg0: i32) -> (i32, i32) {
    %c0_i32 = arith.constant 0 : i32
    %c0_i32_0 = arith.constant 0 : i32
    %c0_i32_1 = arith.constant 0 : i32
    return %c0_i32, %c0_i32_0 : i32, i32
  }
  func.func @transform_7(%arg0: i32) -> (i32, i32) {
    %c0_i32 = arith.constant 0 : i32
    %c0_i32_0 = arith.constant 0 : i32
    %c0_i32_1 = arith.constant 0 : i32
    return %c0_i32, %c0_i32_0 : i32, i32
  }
  func.func @transform_8(%arg0: i32) -> (i32, i32) {
    %c0_i32 = arith.constant 0 : i32
    %c0_i32_0 = arith.constant 0 : i32
    %c0_i32_1 = arith.constant 0 : i32
    return %c0_i32, %c0_i32_0 : i32, i32
  }
  func.func @transform_9(%arg0: i32) -> (i32, i32) {
    %c0_i32 = arith.constant 0 : i32
    %c0_i32_0 = arith.constant 0 : i32
    %c0_i32_1 = arith.constant 0 : i32
    return %c0_i32, %c0_i32_0 : i32, i32
  }
  func.func @transform_10(%arg0: i32) -> (i32, i32) {
    %c0_i32 = arith.constant 0 : i32
    %c0_i32_0 = arith.constant 0 : i32
    %c0_i32_1 = arith.constant 0 : i32
    return %c0_i32, %c0_i32_0 : i32, i32
  }
  func.func @transform_11(%arg0: i32) -> (i32, i32) {
    %c0_i32 = arith.constant 0 : i32
    %c0_i32_0 = arith.constant 0 : i32
    return %c0_i32, %arg0 : i32, i32
  }
}

</mosaic_0001>

<bundles_post_ra>
// kernel: tpu_custom_call.1
= control target key start
LH: loop header
LB: loop body
LE: loop exit
PB: predicated region body
PF: predicated region fallthrough
CT: control target
= control target key end

     0   :  { %s767_s0 = inlined_call_operand.vmem [shape: f32[16,128], index: 0, kind: input, shape index: {}]   ;;  %s768_s1 = inlined_call_operand.vmem [shape: f32[64,32], index: 1, kind: input, shape index: {}]   ;;  %s769_s2 = inlined_call_operand.vmem [shape: f32[64,1], index: 2, kind: input, shape index: {}]   ;;  %s770_s3 = inlined_call_operand.vmem [shape: f32[32,64], index: 3, kind: input, shape index: {}]   ;;  %s771_s4 = inlined_call_operand.vmem [shape: f32[32,1], index: 4, kind: input, shape index: {}]   ;;  %s772_s5 = inlined_call_operand.vmem [shape: f32[32,64], index: 5, kind: input, shape index: {}]   ;;  %s773_s6 = inlined_call_operand.vmem [shape: f32[32,1], index: 6, kind: input, shape index: {}]   ;;  %s774_s7 = inlined_call_operand.vmem [shape: f32[16,32], index: 7, kind: input, shape index: {}]   ;;  %s775_s8 = inlined_call_operand.vmem [shape: f32[16,1], index: 8, kind: input, shape index: {}]   ;;  %s776_s9 = inlined_call_operand.vmem [shape: f32[8,16], index: 9, kind: input, shape index: {}]   ;;  %s777_s10 = inlined_call_operand.vmem [shape: f32[8,1], index: 10, kind: input, shape index: {}]   ;;  %s778_s11 = inlined_call_operand.hbm [shape: f32[8,128], index: 11, kind: output, shape index: {}]  }
   0x1   :  { %v60_v0 = vld [vmem:[%s767_s0 + $0x8] sm:$0xff] }
   0x2   :  { %16 = vsyncpa [#allocation3], 0  ;;  %s532_s19 = smov 1   ;;  %168 = vmatpush.msra.mxu0 %v60_v0  ;;  %v59_v1 = vld [vmem:[%s767_s0] sm:$0xff]  ;;  %494 = vmatpush.msra.mxu3 %v60_v0  ;;  %v39_v2 = vlaneseq  ;;  %v72_v5 = vld [vmem:[%s769_s2 + $0x18] sm:$0xff]  ;;  %v533_v6 = vmov 0  }
   0x3   :  { %87 = vrot.lane.b32.xlu0 %v60_v0, %s532_s19  ;;  %503 = vset.pattern.permute.xlu1 %v533_v6  ;;  %v534_v7 = vmov 0.0   ;;  %v71_v11 = vld [vmem:[%s769_s2 + $0x10] sm:$0xff]  ;;  %v70_v12 = vld [vmem:[%s769_s2 + $0x8] sm:$0xff]  ;;  %v61_v15 = vld [vmem:[%s768_s1] sm:$0xff]  ;;  %vm131_vm1 = vcmask 261120   ;;  %vm233_vm2 = vcmask 523264  }
   0x4   :  { %169 = vmatpush.msra.mxu0 %v59_v1  ;;  %495 = vmatpush.msra.mxu3 %v59_v1  ;;  %v605_v3 = vand.u32 127, %v39_v2  ;;  %v67_v16 = vld [vmem:[%s768_s1 + $0x30] sm:$0xff]  ;;  %v69_v17 = vld [vmem:[%s769_s2] sm:$0xff]  ;;  %v62_v18 = vld [vmem:[%s768_s1 + $0x8] sm:$0xff]  ;;  %vm432_vm4 = vcmask 130048   ;;  %s464_s29 = sshll.u32 %s778_s11, 4  ;;  %s465_s29 = int_to_ptr.hbm [resolvable:$true] %s464_s29 }
   0x5   :  { %504 = vset.pattern.permute.xlu2 %v533_v6  ;;  %108 = vperm.xlu1 %503, %v72_v5   ;;  %v68_v19 = vld [vmem:[%s768_s1 + $0x38] sm:$0xff]  ;;  %v63_v20 = vld [vmem:[%s768_s1 + $0x10] sm:$0xff]  ;;  %v65_v22 = vld [vmem:[%s768_s1 + $0x20] sm:$0xff] }
   0x6   :  { %v45_v4 = vand.u32 7, %v605_v3  ;;  %505 = vset.pattern.permute.xlu0 %v533_v6  ;;  %98 = vperm.xlu2 %504, %v70_v12   ;;  %v64_v21 = vld [vmem:[%s768_s1 + $0x18] sm:$0xff]  ;;  %v66_v24 = vld [vmem:[%s768_s1 + $0x28] sm:$0xff]  ;;  %v75_v43 = vld [vmem:[%s769_s2 + $0x30] sm:$0xff] }
   0x7   :  { %v76_v33 = vld [vmem:[%s769_s2 + $0x38] sm:$0xff]  ;;  %v82_v40 = vld [vmem:[%s771_s4 + $0x8] sm:$0xff]  ;;  %v81_v44 = vld [vmem:[%s771_s4] sm:$0xff] }
   0x8   :  { %vm53_vm0 = vcmp.ge.s32.totalorder %v45_v4, 1  ;;  %v84_v39 = vld [vmem:[%s771_s4 + $0x18] sm:$0xff]  ;;  %v74_v45 = vld [vmem:[%s769_s2 + $0x28] sm:$0xff]  ;;  %v83_v46 = vld [vmem:[%s771_s4 + $0x10] sm:$0xff]  ;;  %vm56_vm3 = vcmp.ge.s32.totalorder %v45_v4, 2 }
   0x9   :  { %v614_v8 = vsel %vm53_vm0, 1.0, %v534_v7  ;;  %v73_v47 = vld [vmem:[%s769_s2 + $0x20] sm:$0xff]  ;;  %v78_v57 = vld [vmem:[%s770_s3 + $0x8] sm:$0xff]  ;;  %v79_v58 = vld [vmem:[%s770_s3 + $0x10] sm:$0xff] }
   0xa   :  { %v77_v56 = vld [vmem:[%s770_s3] sm:$0xff]  ;;  %v80_v59 = vld [vmem:[%s770_s3 + $0x18] sm:$0xff]  ;;  %s535_s3 = smov 2   ;;  %v288_v3 = vld [vmem:[%s772_s5 + $0x8] sm:$0xff] }
   0xb   :  { %85 = vrot.lane.b32.xlu0 %v59_v1, %s532_s19  ;;  %v289_v4 = vld [vmem:[%s772_s5 + $0x10] sm:$0xff] }
   0xd   :  { %103 = vperm.xlu1 %503, %v71_v11  }
   0xe   :  { %93 = vperm.xlu2 %504, %v69_v17  }
  0x60   :  { %v99_v26 = vpop.permute.xlu2 %98 }
  0x68   :  { %v94_v37 = vpop.permute.xlu2 %93 }
  0x75   :  { %v88_v9 = vpop.permute.xlu0 %87 }
  0x76   :  { %v90_v10 = vmul.f32 %v614_v8, %v88_v9 }
  0x77   :  { %v109_v25 = vpop.permute.xlu1 %108 }
  0x78   :  { %170 = vmatpush.msra.mxu0 %v90_v10  ;;  %496 = vmatpush.msra.mxu3 %v90_v10 }
  0x7d   :  { %v86_v13 = vpop.permute.xlu0 %85 }
  0x7e   :  { %v89_v14 = vmul.f32 %v614_v8, %v86_v13 }
  0x7f   :  { %v104_v30 = vpop.permute.xlu1 %103 }
  0x80   :  { %171 = vmatpush.msra.mxu0 %v89_v14  ;;  %497 = vmatpush.msra.mxu3 %v89_v14 }
  0x81   :  { %475 = vmatmul.msk.f32.vlgmr.msra.gmra.mxu0 %vm131_vm1, %v61_v15  ;;  %481 = vmatmul.msk.f32.vlgmr.msra.gmra.mxu3 %vm131_vm1, %v67_v16 }
  0x89   :  { %476 = vmatmul.msk.f32.gmra.mxu0 %vm131_vm1, %v62_v18  ;;  %482 = vmatmul.msk.f32.gmra.mxu3 %vm131_vm1, %v68_v19 }
  0x91   :  { %477 = vmatmul.msk.f32.gmra.mxu0 %vm131_vm1, %v63_v20  ;;  %v291_v20 = vld [vmem:[%s773_s6] sm:$0xff] }
  0x99   :  { %478 = vmatmul.msk.f32.gmra.mxu0 %vm131_vm1, %v64_v21 }
  0xa1   :  { %479 = vmatmul.msk.f32.gmra.mxu0 %vm131_vm1, %v65_v22 }
  0xa9   :  { %480 = vmatmul.msk.f32.gmra.mxu0 %vm131_vm1, %v66_v24 }
  0xfe   :  { %v173_v23 = vpop.f32.mrf.mxu0 }
  0xff   :  { %v174_v41 = vadd.f32 %v173_v23, %v94_v37 }
 0x101   :  { %v197_v42 = vmax.f32 %v174_v41, 0.0 }
 0x104   :  { %v191_v11 = vpop.f32.mrf.mxu3 }
 0x106   :  { %v176_v27 = vpop.f32.mrf.mxu0 }
 0x107   :  { %v177_v28 = vadd.f32 %v176_v27, %v99_v26 }
 0x109   :  { %v198_v29 = vmax.f32 %v177_v28, 0.0 }
 0x10b   :  { %203 = vrot.lane.b32.xlu2 %v198_v29, %s532_s19 }
 0x10c   :  { %v194_v21 = vpop.f32.mrf.mxu3 }
 0x10e   :  { %v179_v31 = vpop.f32.mrf.mxu0 }
 0x10f   :  { %v180_v32 = vadd.f32 %v179_v31, %v104_v30 }
 0x111   :  { %v199_v34 = vmax.f32 %v180_v32, 0.0 }
 0x113   :  { %205 = vrot.lane.b32.xlu1 %v199_v34, %s532_s19  ;;  %128 = vperm.xlu2 %504, %v76_v33  }
 0x116   :  { %v182_v35 = vpop.f32.mrf.mxu0 }
 0x117   :  { %v183_v36 = vadd.f32 %v182_v35, %v109_v25  ;;  %v298_v35 = vld [vmem:[%s775_s8 + $0x8] sm:$0xff] }
 0x119   :  { %v200_v38 = vmax.f32 %v183_v36, 0.0 }
 0x11b   :  { %207 = vrot.lane.b32.xlu0 %v200_v38, %s532_s19  ;;  %254 = vmatpush.msra.mxu1 %v200_v38  ;;  %v293_v38 = vld [vmem:[%s773_s6 + $0x10] sm:$0xff] }
 0x11c   :  { %230 = vperm.xlu1 %503, %v84_v39   ;;  %220 = vperm.xlu2 %504, %v82_v40   ;;  %v474_v39 = vsel %vm56_vm3, 1.0, %v534_v7  ;;  %v290_v7 = vld [vmem:[%s772_s5 + $0x18] sm:$0xff] }
 0x11d   :  { %255 = vmatpush.msra.mxu1 %v199_v34  ;;  %v292_v34 = vld [vmem:[%s773_s6 + $0x8] sm:$0xff] }
 0x11e   :  { %v185_v62 = vpop.f32.mrf.mxu0 }
 0x11f   :  { %256 = vmatpush.msra.mxu1 %v198_v29 }
 0x121   :  { %257 = vmatpush.msra.mxu1 %v197_v42 }
 0x123   :  { %201 = vrot.lane.b32.xlu0 %v197_v42, %s532_s19 }
 0x124   :  { %123 = vperm.xlu1 %503, %v75_v43   ;;  %215 = vperm.xlu2 %504, %v81_v44  }
 0x126   :  { %v188_v2 = vpop.f32.mrf.mxu0 }
 0x12b   :  { %225 = vperm.xlu0 %505, %v83_v46  }
 0x12c   :  { %118 = vperm.xlu1 %503, %v74_v45  }
 0x133   :  { %113 = vperm.xlu0 %505, %v73_v47  }
 0x165   :  { %v204_v51 = vpop.permute.xlu2 %203 }
 0x166   :  { %v210_v53 = vmul.f32 %v614_v8, %v204_v51 }
 0x16d   :  { %v129_v61 = vpop.permute.xlu2 %128 }
 0x16e   :  { %v195_v28 = vadd.f32 %v194_v21, %v129_v61 }
 0x176   :  { %v221_v1 = vpop.permute.xlu2 %220 }
 0x17e   :  { %v216_v23 = vpop.permute.xlu2 %215 }
 0x185   :  { %v206_v48 = vpop.permute.xlu1 %205 }
 0x186   :  { %v211_v52 = vmul.f32 %v614_v8, %v206_v48  ;;  %v287_v48 = vld [vmem:[%s772_s5] sm:$0xff] }
 0x18d   :  { %v208_v49 = vpop.permute.xlu0 %207 }
 0x18e   :  { %v212_v50 = vmul.f32 %v614_v8, %v208_v49  ;;  %v231_v60 = vpop.permute.xlu1 %230 }
 0x190   :  { %258 = vmatpush.msra.mxu1 %v212_v50 }
 0x192   :  { %259 = vmatpush.msra.mxu1 %v211_v52 }
 0x194   :  { %260 = vmatpush.msra.mxu1 %v210_v53 }
 0x195   :  { %v202_v54 = vpop.permute.xlu0 %201 }
 0x196   :  { %v209_v55 = vmul.f32 %v614_v8, %v202_v54  ;;  %v124_v63 = vpop.permute.xlu1 %123 }
 0x197   :  { %v192_v17 = vadd.f32 %v191_v11, %v124_v63 }
 0x198   :  { %261 = vmatpush.msra.mxu1 %v209_v55 }
 0x199   :  { %483 = vmatmul.msk.f32.vlgmr.msra.gmra.mxu1 %vm233_vm2, %v77_v56 }
 0x19d   :  { %v226_v14 = vpop.permute.xlu0 %225 }
 0x19e   :  { %v119_v5 = vpop.permute.xlu1 %118 }
 0x19f   :  { %v189_v9 = vadd.f32 %v188_v2, %v119_v5 }
 0x1a1   :  { %484 = vmatmul.msk.f32.gmra.mxu1 %vm233_vm2, %v78_v57  ;;  %v297_v57 = vld [vmem:[%s775_s8] sm:$0xff] }
 0x1a5   :  { %v114_v27 = vpop.permute.xlu0 %113 }
 0x1a6   :  { %v186_v31 = vadd.f32 %v185_v62, %v114_v27 }
 0x1a9   :  { %485 = vmatmul.msk.f32.gmra.mxu1 %vm233_vm2, %v79_v58  ;;  %v294_v58 = vld [vmem:[%s773_s6 + $0x18] sm:$0xff] }
 0x1b1   :  { %486 = vmatmul.msk.f32.gmra.mxu1 %vm233_vm2, %v80_v59  ;;  %v426_v59 = vld [vmem:[%s777_s10] sm:$0xff] }
 0x216   :  { %v263_v0 = vpop.f32.mrf.mxu1 }
 0x217   :  { %v264_v25 = vadd.f32 %v263_v0, %v216_v23  ;;  %v295_v0 = vld [vmem:[%s774_s7] sm:$0xff] }
 0x218   :  { %v425_v23 = vld [vmem:[%s776_s9] sm:$0xff] }
 0x219   :  { %v275_v30 = vmax.f32 %v264_v25, 0.0 }
 0x21b   :  { %v279_v36 = vadd.f32 %v275_v30, %v186_v31 }
 0x21d   :  { %v283_v37 = vmax.f32 %v279_v36, 0.0 }
 0x21e   :  { %v266_v6 = vpop.f32.mrf.mxu1 }
 0x21f   :  { %v267_v8 = vadd.f32 %v266_v6, %v221_v1  ;;  %v296_v1 = vld [vmem:[%s774_s7 + $0x8] sm:$0xff] }
 0x221   :  { %v276_v10 = vmax.f32 %v267_v8, 0.0 }
 0x223   :  { %v280_v12 = vadd.f32 %v276_v10, %v189_v9 }
 0x225   :  { %v284_v13 = vmax.f32 %v280_v12, 0.0 }
 0x226   :  { %v269_v15 = vpop.f32.mrf.mxu1 }
 0x227   :  { %v270_v16 = vadd.f32 %v269_v15, %v226_v14  ;;  %301 = vrot.lane.b32.xlu0 %v284_v13, %s535_s3 }
 0x229   :  { %v277_v18 = vmax.f32 %v270_v16, 0.0 }
 0x22b   :  { %v281_v19 = vadd.f32 %v277_v18, %v192_v17 }
 0x22d   :  { %v285_v22 = vmax.f32 %v281_v19, 0.0 }
 0x22e   :  { %v272_v24 = vpop.f32.mrf.mxu1 }
 0x22f   :  { %v273_v26 = vadd.f32 %v272_v24, %v231_v60  ;;  %303 = vrot.lane.b32.xlu2 %v285_v22, %s535_s3  ;;  %313 = vperm.xlu0 %505, %v291_v20  }
 0x231   :  { %v278_v29 = vmax.f32 %v273_v26, 0.0 }
 0x233   :  { %v282_v32 = vadd.f32 %v278_v29, %v195_v28 }
 0x235   :  { %v286_v33 = vmax.f32 %v282_v32, 0.0 }
 0x237   :  { %305 = vrot.lane.b32.xlu1 %v286_v33, %s535_s3  ;;  %351 = vmatpush.msra.mxu2 %v286_v33 }
 0x238   :  { %318 = vperm.xlu2 %504, %v292_v34   ;;  %387 = vperm.xlu0 %505, %v298_v35  }
 0x239   :  { %352 = vmatpush.msra.mxu2 %v285_v22 }
 0x23b   :  { %353 = vmatpush.msra.mxu2 %v284_v13 }
 0x23d   :  { %354 = vmatpush.msra.mxu2 %v283_v37 }
 0x23f   :  { %299 = vrot.lane.b32.xlu1 %v283_v37, %s535_s3 }
 0x240   :  { %323 = vperm.xlu0 %505, %v293_v38  }
 0x289   :  { %v304_v40 = vpop.permute.xlu2 %303 }
 0x28a   :  { %v309_v44 = vmul.f32 %v474_v39, %v304_v40 }
 0x292   :  { %v319_v53 = vpop.permute.xlu2 %318 }
 0x299   :  { %v302_v43 = vpop.permute.xlu0 %301 }
 0x29a   :  { %v308_v45 = vmul.f32 %v474_v39, %v302_v43 }
 0x2a1   :  { %v314_v49 = vpop.permute.xlu0 %313 }
 0x2a9   :  { %v306_v41 = vpop.permute.xlu1 %305 }
 0x2aa   :  { %v310_v42 = vmul.f32 %v474_v39, %v306_v41  ;;  %v388_v5 = vpop.permute.xlu0 %387 }
 0x2ac   :  { %355 = vmatpush.msra.mxu2 %v310_v42 }
 0x2ae   :  { %356 = vmatpush.msra.mxu2 %v309_v44 }
 0x2b0   :  { %357 = vmatpush.msra.mxu2 %v308_v45 }
 0x2b1   :  { %v300_v46 = vpop.permute.xlu1 %299 }
 0x2b2   :  { %v307_v47 = vmul.f32 %v474_v39, %v300_v46  ;;  %v324_v15 = vpop.permute.xlu0 %323 }
 0x2b4   :  { %358 = vmatpush.msra.mxu2 %v307_v47 }
 0x2b5   :  { %487 = vmatmul.msk.f32.vlgmr.msra.gmra.mxu2 %vm233_vm2, %v287_v48 }
 0x2bd   :  { %488 = vmatmul.msk.f32.gmra.mxu2 %vm233_vm2, %v288_v3 }
 0x2c5   :  { %489 = vmatmul.msk.f32.gmra.mxu2 %vm233_vm2, %v289_v4 }
 0x2cd   :  { %490 = vmatmul.msk.f32.gmra.mxu2 %vm233_vm2, %v290_v7 }
 0x338   :  { %v360_v50 = vpop.f32.mrf.mxu2 }
 0x339   :  { %v361_v51 = vadd.f32 %v360_v50, %v314_v49 }
 0x33b   :  { %v372_v52 = vmax.f32 %v361_v51, 0.0 }
 0x33d   :  { %374 = vrot.lane.b32.xlu2 %v372_v52, %s535_s3 }
 0x340   :  { %v363_v54 = vpop.f32.mrf.mxu2 }
 0x341   :  { %v364_v55 = vadd.f32 %v363_v54, %v319_v53 }
 0x343   :  { %v373_v56 = vmax.f32 %v364_v55, 0.0 }
 0x345   :  { %376 = vrot.lane.b32.xlu1 %v373_v56, %s535_s3  ;;  %408 = vmatpush.msrb.mxu3 %v373_v56  ;;  %s536_s3 = smov [#allocation2]  }
 0x346   :  { %382 = vperm.xlu2 %504, %v297_v57   ;;  %s462_s27 = sshll.u32 %s536_s3, 4  ;;  %s463_s27 = int_to_ptr.vmem [resolvable:$true] %s462_s27 }
 0x347   :  { %409 = vmatpush.msrb.mxu3 %v372_v52 }
 0x348   :  { %v366_v2 = vpop.f32.mrf.mxu2 }
 0x349   :  { %v367_v16 = vadd.f32 %v366_v2, %v324_v15 }
 0x34d   :  { %328 = vperm.xlu1 %503, %v294_v58  }
 0x350   :  { %v369_v10 = vpop.f32.mrf.mxu2 }
 0x355   :  { %429 = vperm.xlu1 %503, %v426_v59  }
 0x397   :  { %v375_v60 = vpop.permute.xlu2 %374 }
 0x398   :  { %v378_v63 = vmul.f32 %v474_v39, %v375_v60 }
 0x3a0   :  { %v383_v8 = vpop.permute.xlu2 %382 }
 0x3b7   :  { %v377_v61 = vpop.permute.xlu1 %376 }
 0x3b8   :  { %v379_v62 = vmul.f32 %v474_v39, %v377_v61 }
 0x3ba   :  { %410 = vmatpush.msrb.mxu3 %v379_v62 }
 0x3bc   :  { %411 = vmatpush.msrb.mxu3 %v378_v63 }
 0x3bd   :  { %491 = vmatmul.msk.f32.vlgmr.msrb.gmra.mxu3 %vm131_vm1, %v295_v0 }
 0x3bf   :  { %v329_v11 = vpop.permute.xlu1 %328 }
 0x3c0   :  { %v370_v17 = vadd.f32 %v369_v10, %v329_v11 }
 0x3c5   :  { %492 = vmatmul.msk.f32.gmra.mxu3 %vm131_vm1, %v296_v1 }
 0x3c7   :  { %v430_v24 = vpop.permute.xlu1 %429 }
 0x440   :  { %v413_v6 = vpop.f32.mrf.mxu3 }
 0x441   :  { %v414_v9 = vadd.f32 %v413_v6, %v383_v8 }
 0x443   :  { %v419_v13 = vmax.f32 %v414_v9, 0.0 }
 0x445   :  { %v421_v19 = vadd.f32 %v419_v13, %v367_v16 }
 0x447   :  { %v423_v22 = vmax.f32 %v421_v19, 0.0 }
 0x448   :  { %v416_v12 = vpop.f32.mrf.mxu3 }
 0x449   :  { %v417_v14 = vadd.f32 %v416_v12, %v388_v5 }
 0x44b   :  { %v420_v18 = vmax.f32 %v417_v14, 0.0 }
 0x44d   :  { %v422_v20 = vadd.f32 %v420_v18, %v370_v17 }
 0x44f   :  { %v424_v21 = vmax.f32 %v422_v20, 0.0 }
 0x451   :  { %450 = vmatpush.msra.mxu3 %v424_v21 }
 0x453   :  { %451 = vmatpush.msra.mxu3 %v423_v22 }
 0x454   :  { %493 = vmatmul.msk.f32.vlgmr.msra.gmra.mxu3 %vm432_vm4, %v425_v23 }
 0x4d7   :  { %v453_v25 = vpop.f32.mrf.mxu3 }
 0x4d8   :  { %v454_v26 = vadd.f32 %v453_v25, %v430_v24 }
 0x4da   :  { %456 = vst [vmem:[#allocation2] sm:$0xff] %v454_v26 }
 0x4db   :  { %467 = dma.vmem_to_hbm [thread:$0]  %s463_s27, 128, %s465_s29, [#allocation3]  }
 0x4dc   :  { %530 = dma.done.wait [#allocation3], 128  }
 0x4dd   :  { %531 = vsyncadd [#allocation3], 4294967168 }
 0x4de   :  { %472 = vsyncpa [#allocation3], 1 }

</bundles_post_ra>
